<compile_context>
chip_gen: v5e
topology: v5e:2x2
jax: 0.10.0
libtpu: 0.0.40
codegen_flags: <defaults>
</compile_context>

<pallas_src>
import jax
import jax.numpy as jnp
import numpy as np
from jax import lax
from jax.experimental import pallas as pl
from jax.experimental.pallas import tpu as pltpu  # noqa: F401  (TPU backend assumed)

# ---- problem sizes (small, consistent with the module) -------------------------------
B = 2          # batch
C = 4          # channels
WDIM = 16      # "width"  (x.shape[2])
HDIM = 16      # "height" (x.shape[3])
Q = 8          # DETR object queries
D = 32         # hidden dim
NUM_CLASSES = 7
K = NUM_CLASSES + 1   # classes + no-object
KP4 = K + 4           # fused class+box head width
OUT_W = 128           # lane-dense packed output width (one unmasked (8,128)-aligned store)
PARAM_ROWS = 16       # packed param slab rows: [0:C]=w_fused, [8:8+Q]=q_head (8-aligned)


def make_params():
    """Synthetic DETR head parameters (the real `self.model` is a ctor argument).

    Batch-independent products are precomputed here so the kernel's per-call work is minimal.
    """
    key = jax.random.PRNGKey(0)
    k1, k2, k3, k4, k5, k6 = jax.random.split(key, 6)
    wf = 0.2 * jax.random.normal(k1, (C, D), jnp.float32)    # backbone projection
    q = 0.2 * jax.random.normal(k2, (Q, D), jnp.float32)     # query embeddings
    wc = 0.2 * jax.random.normal(k3, (D, K), jnp.float32)    # class head
    bc = 0.1 * jax.random.normal(k4, (1, K), jnp.float32)
    wb = 0.2 * jax.random.normal(k5, (D, 4), jnp.float32)    # bbox head
    bb = 0.1 * jax.random.normal(k6, (1, 4), jnp.float32)
    w_head = jnp.concatenate([wc, wb], axis=1)               # (D, K+4) fused class+box head
    b_head = jnp.concatenate([bc, bb], axis=1)               # (1, K+4)

    # ---- batch-independent precompute (kills 2 of 3 matmuls + 3 input DMAs) ----------
    S = WDIM * HDIM
    w_fused = (wf @ w_head) / float(S)                       # (C, K+4)   (mean's 1/S folded)
    q_head = q @ w_head + b_head                             # (Q, K+4)   (bias folded)
    slab = jnp.zeros((PARAM_ROWS, KP4), jnp.float32)
    slab = slab.at[0:C, :].set(w_fused)
    slab = slab.at[8:8 + Q, :].set(q_head)

    return dict(wf=wf, q=q, w_head=w_head, b_head=b_head, head_slab=slab)


def wrapped_detr_forward(x, params):
    """Returns stacked (scores, labels, boxes); `to_results_list` gives the per-image
    list-of-dicts view matching the torch module's return type."""
    Bx, Cx, Wx, Hx = x.shape
    Sx = Wx * Hx
    x3 = x.reshape(Bx, Cx, Sx)            # channels -> sublanes, fused spatial -> lanes

    slab = params["head_slab"]
    Kn = slab.shape[1] - 4                # K (classes + no-object)
    Qn = Q

    # image_sizes[i] = [x[i].shape[1], x[i].shape[2]] = [W, H];
    # PostProcess: img_h = W, img_w = H (torch code, bug-for-bug);
    # scale_fct = [img_w, img_h, img_w, img_h].  Python floats => legal in-kernel scalars.
    img_h = float(Wx)
    img_w = float(Hx)

    def fused_kernel(x_ref, p_ref, out_ref):
        # ---- synthetic DETR head (`self.model`), batch-dependent part only ----------
        xsum = jnp.sum(x_ref[...], axis=-1)            # (B, C); 1/S already in w_fused
        w_fused = p_ref[0:Cx, :]                       # (C, K+4)
        q_head = p_ref[8:8 + Qn, :]                    # (Q, K+4)

        # (B,C)@(C,K+4) with C=4 as broadcast FMAs on the VPU (no MXU round-trip)
        head_f = xsum[:, 0:1] * w_fused[0:1, :]
        for c in range(1, Cx):
            head_f = head_f + xsum[:, c:c + 1] * w_fused[c:c + 1, :]   # (B, K+4)

        head = q_head[None, :, :] + head_f[:, None, :]                 # (B, Q, K+4)
        logits = head[..., :Kn]                                        # (B, Q, K)
        boxes = jax.nn.sigmoid(head[..., Kn:])                         # (B, Q, 4)

        # ---- PostProcess (exact torch semantics; softmax is monotonic) ---------------
        m = jnp.max(logits, axis=-1, keepdims=True)
        denom = jnp.sum(jnp.exp(logits - m), axis=-1, keepdims=True)
        pc_logits = logits[..., :Kn - 1]                               # drop "no-object"
        max_pc = jnp.max(pc_logits, axis=-1, keepdims=True)
        scores = jnp.exp(max_pc - m) / denom                           # (B, Q, 1) exact
        idx = lax.broadcasted_iota(jnp.int32, pc_logits.shape, 2)
        labels = jnp.min(jnp.where(pc_logits == max_pc, idx, Kn - 1),
                         axis=-1, keepdims=True)                       # first max index

        # cxcywh -> xyxy, scaled by [img_w, img_h, img_w, img_h] (scalar constants)
        cx = boxes[..., 0:1]
        cy = boxes[..., 1:2]
        w = boxes[..., 2:3]
        h = boxes[..., 3:4]
        x1 = (cx - 0.5 * w) * img_w
        y1 = (cy - 0.5 * h) * img_h
        x2 = (cx + 0.5 * w) * img_w
        y2 = (cy + 0.5 * h) * img_h

        # ---- lane-dense packed output: ONE unmasked full-tile store -------------------
        pad = jnp.zeros((Bx, Qn, OUT_W - 6), jnp.float32)
        out_ref[...] = jnp.concatenate(
            [x1, y1, x2, y2, scores, labels.astype(jnp.float32), pad], axis=-1)

    packed = pl.pallas_call(
        fused_kernel,
        out_shape=jax.ShapeDtypeStruct((Bx, Qn, OUT_W), jnp.float32),
    )(x3, slab)

    boxes = packed[..., 0:4]
    scores = packed[..., 4]
    labels = packed[..., 5].astype(jnp.int32)   # torch would give int64; int32 here
    return scores, labels, boxes


def to_results_list(scores, labels, boxes):
    """Host-side glue matching the torch module's list-of-dicts return type (built lazily)."""
    return [{"scores": scores[i], "labels": labels[i], "boxes": boxes[i]}
            for i in range(scores.shape[0])]


# ---- pure-JAX reference for verification ---------------------------------------------
def reference_forward(x, params):
    Bx, Cx, Wx, Hx = x.shape
    pooled = x.reshape(Bx, Cx, -1).mean(-1)
    feat = pooled @ params["wf"]
    head = (params["q"] @ params["w_head"])[None, :, :] \
        + (feat @ params["w_head"])[:, None, :] + params["b_head"]
    logits = head[..., :K]
    boxes = jax.nn.sigmoid(head[..., K:])
    prob = jax.nn.softmax(logits, axis=-1)
    pc = prob[..., :-1]
    scores = pc.max(-1)
    labels = pc.argmax(-1)
    ctr, wh = boxes[..., :2], boxes[..., 2:]
    xyxy = jnp.concatenate([ctr - 0.5 * wh, ctr + 0.5 * wh], axis=-1)
    img_h, img_w = float(Wx), float(Hx)
    scale = jnp.array([img_w, img_h, img_w, img_h], jnp.float32)
    return scores, labels, xyxy * scale[None, None, :]


if __name__ == "__main__":
    key = jax.random.PRNGKey(0)
    x = jax.random.normal(key, (B, C, WDIM, HDIM), jnp.float32)
    params = make_params()

    scores, labels, boxes = wrapped_detr_forward(x, params)
    jax.block_until_ready((scores, labels, boxes))

    ref_scores, ref_labels, ref_boxes = reference_forward(x, params)
    np.testing.assert_allclose(np.asarray(scores), np.asarray(ref_scores),
                               rtol=1e-4, atol=1e-4)
    np.testing.assert_array_equal(np.asarray(labels), np.asarray(ref_labels))
    np.testing.assert_allclose(np.asarray(boxes), np.asarray(ref_boxes),
                               rtol=1e-4, atol=1e-4)

    # list-of-dicts view matching the torch module's return type (built lazily on request)
    results = to_results_list(scores, labels, boxes)
    assert len(results) == B and set(results[0]) == {"scores", "labels", "boxes"}

    print("KERNEL_OK")
</pallas_src>

<mosaic_0001>
module attributes {stable_mosaic.version = 11 : i64} {
  func.func @fused_kernel(%arg0: memref<2x4x256xf32, #tpu.memory_space<vmem>>, %arg1: memref<16x12xf32, #tpu.memory_space<vmem>>, %arg2: memref<2x8x128xf32, #tpu.memory_space<vmem>>) attributes {dimension_semantics = [], scalar_prefetch = 0 : i64, scratch_operands = 0 : i64, tpu.core_type = #tpu.core_type<tc>} {
    %c0 = arith.constant 0 : index
    %c0_0 = arith.constant 0 : index
    %c0_1 = arith.constant 0 : index
    %0 = vector.load %arg0[%c0, %c0_0, %c0_1] : memref<2x4x256xf32, #tpu.memory_space<vmem>>, vector<2x4x256xf32>
    %cst = arith.constant dense<0.000000e+00> : vector<2x4xf32>
    %1 = vector.multi_reduction <add>, %0, %cst [2] : vector<2x4x256xf32> to vector<2x4xf32>
    %c0_2 = arith.constant 0 : index
    %c0_3 = arith.constant 0 : index
    %2 = vector.load %arg1[%c0_2, %c0_3] : memref<16x12xf32, #tpu.memory_space<vmem>>, vector<4x12xf32>
    %c8 = arith.constant 8 : index
    %c0_4 = arith.constant 0 : index
    %3 = vector.load %arg1[%c8, %c0_4] : memref<16x12xf32, #tpu.memory_space<vmem>>, vector<8x12xf32>
    %4 = vector.extract_strided_slice %1 {offsets = [0, 0], sizes = [2, 1], strides = [1, 1]} : vector<2x4xf32> to vector<2x1xf32>
    %5 = vector.extract_strided_slice %2 {offsets = [0, 0], sizes = [1, 12], strides = [1, 1]} : vector<4x12xf32> to vector<1x12xf32>
    %6 = vector.broadcast %4 : vector<2x1xf32> to vector<2x12xf32>
    %7 = vector.broadcast %5 : vector<1x12xf32> to vector<2x12xf32>
    %8 = arith.mulf %6, %7 : vector<2x12xf32>
    %9 = vector.extract_strided_slice %1 {offsets = [0, 1], sizes = [2, 1], strides = [1, 1]} : vector<2x4xf32> to vector<2x1xf32>
    %10 = vector.extract_strided_slice %2 {offsets = [1, 0], sizes = [1, 12], strides = [1, 1]} : vector<4x12xf32> to vector<1x12xf32>
    %11 = vector.broadcast %9 : vector<2x1xf32> to vector<2x12xf32>
    %12 = vector.broadcast %10 : vector<1x12xf32> to vector<2x12xf32>
    %13 = arith.mulf %11, %12 : vector<2x12xf32>
    %14 = arith.addf %8, %13 : vector<2x12xf32>
    %15 = vector.extract_strided_slice %1 {offsets = [0, 2], sizes = [2, 1], strides = [1, 1]} : vector<2x4xf32> to vector<2x1xf32>
    %16 = vector.extract_strided_slice %2 {offsets = [2, 0], sizes = [1, 12], strides = [1, 1]} : vector<4x12xf32> to vector<1x12xf32>
    %17 = vector.broadcast %15 : vector<2x1xf32> to vector<2x12xf32>
    %18 = vector.broadcast %16 : vector<1x12xf32> to vector<2x12xf32>
    %19 = arith.mulf %17, %18 : vector<2x12xf32>
    %20 = arith.addf %14, %19 : vector<2x12xf32>
    %21 = vector.extract_strided_slice %1 {offsets = [0, 3], sizes = [2, 1], strides = [1, 1]} : vector<2x4xf32> to vector<2x1xf32>
    %22 = vector.extract_strided_slice %2 {offsets = [3, 0], sizes = [1, 12], strides = [1, 1]} : vector<4x12xf32> to vector<1x12xf32>
    %23 = vector.broadcast %21 : vector<2x1xf32> to vector<2x12xf32>
    %24 = vector.broadcast %22 : vector<1x12xf32> to vector<2x12xf32>
    %25 = arith.mulf %23, %24 : vector<2x12xf32>
    %26 = arith.addf %20, %25 : vector<2x12xf32>
    %27 = vector.shape_cast %3 : vector<8x12xf32> to vector<1x8x12xf32>
    %28 = vector.shape_cast %26 : vector<2x12xf32> to vector<2x1x12xf32>
    %29 = vector.broadcast %27 : vector<1x8x12xf32> to vector<2x8x12xf32>
    %30 = vector.broadcast %28 : vector<2x1x12xf32> to vector<2x8x12xf32>
    %31 = arith.addf %29, %30 : vector<2x8x12xf32>
    %32 = vector.extract_strided_slice %31 {offsets = [0, 0, 0], sizes = [2, 8, 8], strides = [1, 1, 1]} : vector<2x8x12xf32> to vector<2x8x8xf32>
    %33 = vector.extract_strided_slice %31 {offsets = [0, 0, 8], sizes = [2, 8, 4], strides = [1, 1, 1]} : vector<2x8x12xf32> to vector<2x8x4xf32>
    %34 = arith.negf %33 : vector<2x8x4xf32>
    %35 = math.exp %34 : vector<2x8x4xf32>
    %cst_5 = arith.constant 1.000000e+00 : f32
    %36 = vector.broadcast %cst_5 : f32 to vector<2x8x4xf32>
    %37 = arith.addf %36, %35 : vector<2x8x4xf32>
    %38 = arith.divf %36, %37 : vector<2x8x4xf32>
    %cst_6 = arith.constant dense<0xFF800000> : vector<2x8xf32>
    %39 = vector.multi_reduction <maximumf>, %32, %cst_6 [2] : vector<2x8x8xf32> to vector<2x8xf32>
    %40 = vector.shape_cast %39 : vector<2x8xf32> to vector<2x8x1xf32>
    %41 = vector.broadcast %40 : vector<2x8x1xf32> to vector<2x8x8xf32>
    %42 = arith.subf %32, %41 : vector<2x8x8xf32>
    %43 = math.exp %42 : vector<2x8x8xf32>
    %cst_7 = arith.constant dense<0.000000e+00> : vector<2x8xf32>
    %44 = vector.multi_reduction <add>, %43, %cst_7 [2] : vector<2x8x8xf32> to vector<2x8xf32>
    %45 = vector.shape_cast %44 : vector<2x8xf32> to vector<2x8x1xf32>
    %46 = vector.extract_strided_slice %32 {offsets = [0, 0, 0], sizes = [2, 8, 7], strides = [1, 1, 1]} : vector<2x8x8xf32> to vector<2x8x7xf32>
    %cst_8 = arith.constant dense<0xFF800000> : vector<2x8xf32>
    %47 = vector.multi_reduction <maximumf>, %46, %cst_8 [2] : vector<2x8x7xf32> to vector<2x8xf32>
    %48 = vector.shape_cast %47 : vector<2x8xf32> to vector<2x8x1xf32>
    %49 = arith.subf %48, %40 : vector<2x8x1xf32>
    %50 = math.exp %49 : vector<2x8x1xf32>
    %51 = arith.divf %50, %45 : vector<2x8x1xf32>
    %52 = tpu.iota {dimensions = array<i32: 2>} : vector<2x8x7xi32>
    %53 = vector.broadcast %48 : vector<2x8x1xf32> to vector<2x8x7xf32>
    %54 = arith.cmpf oeq, %46, %53 : vector<2x8x7xf32>
    %c7_i32 = arith.constant 7 : i32
    %55 = vector.broadcast %c7_i32 : i32 to vector<2x8x7xi32>
    %56 = arith.select %54, %52, %55 : vector<2x8x7xi1>, vector<2x8x7xi32>
    %cst_9 = arith.constant dense<2147483647> : vector<2x8xi32>
    %57 = vector.multi_reduction <minsi>, %56, %cst_9 [2] : vector<2x8x7xi32> to vector<2x8xi32>
    %58 = vector.shape_cast %57 : vector<2x8xi32> to vector<2x8x1xi32>
    %59 = vector.extract_strided_slice %38 {offsets = [0, 0, 0], sizes = [2, 8, 1], strides = [1, 1, 1]} : vector<2x8x4xf32> to vector<2x8x1xf32>
    %60 = vector.extract_strided_slice %38 {offsets = [0, 0, 1], sizes = [2, 8, 1], strides = [1, 1, 1]} : vector<2x8x4xf32> to vector<2x8x1xf32>
    %61 = vector.extract_strided_slice %38 {offsets = [0, 0, 2], sizes = [2, 8, 1], strides = [1, 1, 1]} : vector<2x8x4xf32> to vector<2x8x1xf32>
    %62 = vector.extract_strided_slice %38 {offsets = [0, 0, 3], sizes = [2, 8, 1], strides = [1, 1, 1]} : vector<2x8x4xf32> to vector<2x8x1xf32>
    %cst_10 = arith.constant 5.000000e-01 : f32
    %63 = vector.broadcast %cst_10 : f32 to vector<2x8x1xf32>
    %64 = arith.mulf %63, %61 : vector<2x8x1xf32>
    %65 = arith.subf %59, %64 : vector<2x8x1xf32>
    %cst_11 = arith.constant 1.600000e+01 : f32
    %66 = vector.broadcast %cst_11 : f32 to vector<2x8x1xf32>
    %67 = arith.mulf %65, %66 : vector<2x8x1xf32>
    %cst_12 = arith.constant 5.000000e-01 : f32
    %68 = vector.broadcast %cst_12 : f32 to vector<2x8x1xf32>
    %69 = arith.mulf %68, %62 : vector<2x8x1xf32>
    %70 = arith.subf %60, %69 : vector<2x8x1xf32>
    %cst_13 = arith.constant 1.600000e+01 : f32
    %71 = vector.broadcast %cst_13 : f32 to vector<2x8x1xf32>
    %72 = arith.mulf %70, %71 : vector<2x8x1xf32>
    %cst_14 = arith.constant 5.000000e-01 : f32
    %73 = vector.broadcast %cst_14 : f32 to vector<2x8x1xf32>
    %74 = arith.mulf %73, %61 : vector<2x8x1xf32>
    %75 = arith.addf %59, %74 : vector<2x8x1xf32>
    %cst_15 = arith.constant 1.600000e+01 : f32
    %76 = vector.broadcast %cst_15 : f32 to vector<2x8x1xf32>
    %77 = arith.mulf %75, %76 : vector<2x8x1xf32>
    %cst_16 = arith.constant 5.000000e-01 : f32
    %78 = vector.broadcast %cst_16 : f32 to vector<2x8x1xf32>
    %79 = arith.mulf %78, %62 : vector<2x8x1xf32>
    %80 = arith.addf %60, %79 : vector<2x8x1xf32>
    %cst_17 = arith.constant 1.600000e+01 : f32
    %81 = vector.broadcast %cst_17 : f32 to vector<2x8x1xf32>
    %82 = arith.mulf %80, %81 : vector<2x8x1xf32>
    %cst_18 = arith.constant 0.000000e+00 : f32
    %83 = vector.broadcast %cst_18 : f32 to vector<2x8x122xf32>
    %84 = arith.sitofp %58 : vector<2x8x1xi32> to vector<2x8x1xf32>
    %85 = tpu.concatenate %67, %72, %77, %82, %51, %84, %83 in 2 : vector<2x8x1xf32>, vector<2x8x1xf32>, vector<2x8x1xf32>, vector<2x8x1xf32>, vector<2x8x1xf32>, vector<2x8x1xf32>, vector<2x8x122xf32> -> vector<2x8x128xf32>
    %c0_19 = arith.constant 0 : index
    %c0_20 = arith.constant 0 : index
    %c0_21 = arith.constant 0 : index
    %86 = vector.load %arg2[%c0_19, %c0_20, %c0_21] : memref<2x8x128xf32, #tpu.memory_space<vmem>>, vector<2x8x128xf32>
    tpu.vector_store %arg2[%c0_19, %c0_20, %c0_21], %85 {strides = array<i32>} : memref<2x8x128xf32, #tpu.memory_space<vmem>>, vector<2x8x128xf32>,
    return
  }
}

</mosaic_0001>

<bundles_post_ra>
// kernel: tpu_custom_call.1
= control target key start
LH: loop header
LB: loop body
LE: loop exit
PB: predicated region body
PF: predicated region fallthrough
CT: control target
= control target key end

     0   :  { %7 = vsyncpa [#allocation3], 0  ;;  %s650_s0 = inlined_call_operand.hbm [shape: f32[2,4,256], index: 0, kind: input, shape index: {}]   ;;  %s651_s1 = inlined_call_operand.hbm [shape: f32[16,12], index: 1, kind: input, shape index: {}]   ;;  %s652_s2 = inlined_call_operand.hbm [shape: f32[2,8,128], index: 2, kind: output, shape index: {}]  }
   0x1   :  { %8 = vsyncpa [#allocation6], 0 }
   0x2   :  { %9 = vsyncpa [#allocation4], 0  ;;  %s14_s11 = sshll.u32 %s650_s0, 4  ;;  %s545_s12 = smov [#allocation2]   ;;  %s15_s11 = int_to_ptr.hbm [resolvable:$true] %s14_s11 }
   0x3   :  { %s16_s13 = sshll.u32 %s545_s12, 4  ;;  %s27_s16 = sshll.u32 %s651_s1, 4  ;;  %s17_s13 = int_to_ptr.vmem [resolvable:$true] %s16_s13  ;;  %s28_s16 = int_to_ptr.hbm [resolvable:$true] %s27_s16 }
   0x4   :  { %s546_s17 = smov 128   ;;  %s547_s18 = smov 8  }
   0x5   :  { %22 = dma.hbm_to_vmem [thread:$0]  %s15_s11, 256, %s17_s13, [#allocation3], %s546_s17, %s546_s17, %s547_s18  }
   0x6   :  { %s548_s19 = smov [#allocation5]  }
   0x7   :  { %s29_s20 = sshll.u32 %s548_s19, 4  ;;  %s30_s20 = int_to_ptr.vmem [resolvable:$true] %s29_s20 }
   0x8   :  { %35 = dma.hbm_to_vmem [thread:$0]  %s28_s16, 256, %s30_s20, [#allocation6], %s546_s17, %s546_s17, %s547_s18  }
   0x9   :  { %539 = dma.done.wait [#allocation3], 256  }
   0xa   :  { %540 = vsyncadd [#allocation3], 4294967040 }
   0xb   :  { %541 = dma.done.wait [#allocation6], 256  }
   0xc   :  { %542 = vsyncadd [#allocation6], 4294967040  ;;  %v76_v0 = vlaneseq  ;;  %v70_v2 = vld [vmem:[#allocation5] sm:$0xf]  ;;  %v44_v3 = vld [vmem:[#allocation2] sm:$0xff]  ;;  %vm59_vm0 = vcmask 1043456  }
   0xd   :  { %v45_v4 = vld [vmem:[#allocation2 + $0x8] sm:$0xff]  ;;  %v74_v5 = vperm.slane %v70_v2, 0  ;;  %48 = vst [vmem:[#allocation1] ss:$2 sm:$0xff] %v44_v3  ;;  %v96_v6 = vperm.slane %v70_v2, 1  ;;  %v122_v18 = vperm.slane %v70_v2, 2 }
   0xe   :  { %v77_v1 = vshrl.u32 %v76_v0, 7  ;;  %52 = vst [vmem:[#allocation1 + $0x10] ss:$2 sm:$0xff] %v45_v4  ;;  %v148_v19 = vperm.slane %v70_v2, 3  ;;  %v549_v20 = vmov 0   ;;  %v583_v4 = vand.u32 127, %v76_v0 }
   0xf   :  { %vm193_vm1 = vcmask 130112   ;;  %vm277_vm2 = vcmask 56320   ;;  %vm258_vm3 = vcmask 64512   ;;  %s550_s0 = smov 126   ;;  %s551_s1 = smov 120  }
  0x10   :  { %438 = vset.pattern.permute.xlu1 %v77_v1  ;;  %439 = vset.pattern.permute.xlu2 %v77_v1  ;;  %v84_v11 = vadd.s32 8, %v77_v1  ;;  %s552_s21 = smov 122   ;;  %s553_s22 = smov [#allocation7]  }
  0x11   :  { %442 = vset.pattern.permute.xlu0 %v77_v1  ;;  %s411_s23 = sshll.u32 %s553_s22, 4  ;;  %s413_s26 = sshll.u32 %s652_s2, 4  ;;  %s412_s23 = int_to_ptr.vmem [resolvable:$true] %s411_s23  ;;  %s414_s26 = int_to_ptr.hbm [resolvable:$true] %s413_s26 }
  0x14   :  { %v49_v7 = vld.sshfl [vmem:[#allocation1] sm:$0xff pattern:$0x75316420]  ;;  %v50_v8 = vld.sshfl [vmem:[#allocation1 + $0x8] sm:$0xff pattern:$0x75316420] }
  0x15   :  { %v60_v9 = vsel %vm59_vm0, %v49_v7, 0.0  ;;  %v61_v10 = vsel %vm59_vm0, %v50_v8, 0.0  ;;  %v53_v13 = vld.sshfl [vmem:[#allocation1 + $0x10] sm:$0xff pattern:$0x75316420] }
  0x16   :  { %v62_v12 = vadd.f32 %v61_v10, %v60_v9  ;;  %v54_v14 = vld.sshfl [vmem:[#allocation1 + $0x18] sm:$0xff pattern:$0x75316420]  ;;  %v65_v15 = vsel %vm59_vm0, %v53_v13, 0.0  ;;  %v71_v9 = vld [vmem:[#allocation5 + $0x8] sm:$0xff] }
  0x17   :  { %v66_v16 = vsel %vm59_vm0, %v54_v14, 0.0 }
  0x18   :  { %80 = vperm.xlu1 %438, %v74_v5   ;;  %102 = vperm.xlu2 %439, %v96_v6   ;;  %v67_v17 = vadd.f32 %v66_v16, %v65_v15 }
  0x19   :  { %63 = vadd.xlane.f32.xlu0 %v62_v12 }
  0x20   :  { %440 = vset.pattern.permute.xlu1 %v84_v11  ;;  %441 = vset.pattern.permute.xlu2 %v84_v11 }
  0x21   :  { %68 = vadd.xlane.f32.xlu0 %v67_v17 }
  0x28   :  { %86 = vperm.xlu1 %440, %v74_v5   ;;  %108 = vperm.xlu2 %441, %v96_v6   ;;  %v191_v6 = vadd.s32 4294967288, %v583_v4 }
  0x30   :  { %134 = vperm.xlu1 %440, %v122_v18   ;;  %443 = vset.pattern.permute.xlu2 %v77_v1 }
  0x35   :  { %128 = vperm.xlu0 %442, %v122_v18  }
  0x38   :  { %160 = vperm.xlu1 %440, %v148_v19   ;;  %154 = vperm.xlu2 %443, %v148_v19  }
  0x3d   :  { %446 = vset.pattern.permute.xlu0 %v549_v20 }
  0x40   :  { %445 = vset.pattern.permute.xlu1 %v549_v20  ;;  %444 = vset.pattern.permute.xlu2 %v549_v20 }
  0x72   :  { %v103_v22 = vpop.permute.xlu2 %102 }
  0x82   :  { %v109_v25 = vpop.permute.xlu2 %108 }
  0x8a   :  { %v81_v21 = vpop.permute.xlu1 %80 }
  0x8c   :  { %v64_v24 = vpop.xlane.xlu0 %63 }
  0x8d   :  { %v94_v27 = vperm.slane %v64_v24, 1  ;;  %v72_v28 = vperm.slane %v64_v24, 0  ;;  %v120_v29 = vperm.slane %v64_v24, 2  ;;  %v146_v37 = vperm.slane %v64_v24, 3 }
  0x8f   :  { %v113_v30 = vmul.f32 %v109_v25, %v94_v27  ;;  %v112_v38 = vmul.f32 %v103_v22, %v94_v27  ;;  %v90_v39 = vmul.f32 %v81_v21, %v72_v28 }
  0x91   :  { %v116_v50 = vadd.f32 %v112_v38, %v90_v39 }
  0x92   :  { %v155_v46 = vpop.permute.xlu2 %154 }
  0x93   :  { %v164_v53 = vmul.f32 %v155_v46, %v146_v37 }
  0x94   :  { %v69_v32 = vpop.xlane.xlu0 %68 }
  0x95   :  { %v73_v35 = vperm.slane %v69_v32, 0  ;;  %v95_v36 = vperm.slane %v69_v32, 1  ;;  %v121_v41 = vperm.slane %v69_v32, 2  ;;  %v147_v47 = vperm.slane %v69_v32, 3 }
  0x97   :  { %v115_v45 = vmul.f32 %v109_v25, %v95_v36  ;;  %v92_v54 = vmul.f32 %v81_v21, %v73_v35  ;;  %v114_v55 = vmul.f32 %v103_v22, %v95_v36  ;;  %v166_v1 = vmul.f32 %v155_v46, %v147_v47 }
  0x99   :  { %v118_v62 = vadd.f32 %v114_v55, %v92_v54 }
  0x9a   :  { %v87_v23 = vpop.permute.xlu1 %86 }
  0x9b   :  { %v91_v31 = vmul.f32 %v87_v23, %v72_v28  ;;  %v93_v44 = vmul.f32 %v87_v23, %v73_v35 }
  0x9d   :  { %v117_v34 = vadd.f32 %v113_v30, %v91_v31  ;;  %v119_v57 = vadd.f32 %v115_v45, %v93_v44 }
  0xa2   :  { %v135_v26 = vpop.permute.xlu1 %134 }
  0xa3   :  { %v139_v33 = vmul.f32 %v135_v26, %v120_v29  ;;  %v141_v52 = vmul.f32 %v135_v26, %v121_v41 }
  0xa5   :  { %v143_v42 = vadd.f32 %v139_v33, %v117_v34  ;;  %v145_v61 = vadd.f32 %v141_v52, %v119_v57 }
  0xa7   :  { %v129_v49 = vpop.permute.xlu0 %128 }
  0xa8   :  { %v138_v51 = vmul.f32 %v129_v49, %v120_v29  ;;  %v140_v59 = vmul.f32 %v129_v49, %v121_v41 }
  0xaa   :  { %v161_v40 = vpop.permute.xlu1 %160  ;;  %v142_v56 = vadd.f32 %v138_v51, %v116_v50  ;;  %v144_v2 = vadd.f32 %v140_v59, %v118_v62 }
  0xab   :  { %v165_v43 = vmul.f32 %v161_v40, %v146_v37  ;;  %v167_v58 = vmul.f32 %v161_v40, %v147_v47 }
  0xac   :  { %v168_v60 = vadd.f32 %v164_v53, %v142_v56  ;;  %v170_v3 = vadd.f32 %v166_v1, %v144_v2 }
  0xad   :  { %v169_v48 = vadd.f32 %v165_v43, %v143_v42  ;;  %v171_v63 = vadd.f32 %v167_v58, %v145_v61 }
  0xae   :  { %177 = vperm.xlu2 %444, %v168_v60  }
  0xaf   :  { %180 = vperm.xlu1 %445, %v169_v48  }
  0xb6   :  { %183 = vperm.xlu2 %444, %v170_v3  }
  0xb7   :  { %186 = vperm.xlu1 %445, %v171_v63  }
 0x108   :  { %v178_v5 = vpop.permute.xlu2 %177 }
 0x109   :  { %v190_v8 = vperm.slane %v178_v5, %v583_v4 }
 0x110   :  { %v184_v13 = vpop.permute.xlu2 %183 }
 0x111   :  { %v195_v17 = vperm.slane %v184_v13, %v583_v4 }
 0x121   :  { %v181_v7 = vpop.permute.xlu1 %180 }
 0x122   :  { %v192_v10 = vperm.slane %v181_v7, %v191_v6 }
 0x124   :  { %v194_v11 = vsel %vm193_vm1, %v192_v10, %v190_v8 }
 0x125   :  { %v588_v12 = vadd.f32 %v194_v11, %v71_v9 }
 0x127   :  { %v427_v14 = vmul.f32 -1.442695, %v588_v12  ;;  %v278_v0 = vsel %vm277_vm2, %v588_v12, -inf  ;;  %v259_v15 = vsel %vm258_vm3, %v588_v12, -inf }
 0x128   :  { %279 = vmax.xlane.f32.xlu2 %v278_v0  ;;  %260 = vmax.xlane.f32.xlu0 %v259_v15 }
 0x129   :  { %447 = vpow2.f32 %v427_v14  ;;  %v187_v16 = vpop.permute.xlu1 %186 }
 0x12a   :  { %v196_v18 = vperm.slane %v187_v16, %v191_v6 }
 0x12c   :  { %v197_v19 = vsel %vm193_vm1, %v196_v18, %v195_v17 }
 0x12d   :  { %v597_v20 = vadd.f32 %v197_v19, %v71_v9 }
 0x12f   :  { %v448_v21 = vpop.eup %447  ;;  %v428_v22 = vmul.f32 -1.442695, %v597_v20  ;;  %v281_v23 = vsel %vm277_vm2, %v597_v20, -inf  ;;  %v262_v24 = vsel %vm258_vm3, %v597_v20, -inf }
 0x130   :  { %v226_v25 = vadd.f32 1.0, %v448_v21  ;;  %282 = vmax.xlane.f32.xlu1 %v281_v23  ;;  %263 = vmax.xlane.f32.xlu2 %v262_v24 }
 0x131   :  { %449 = vpow2.f32 %v428_v22 }
 0x132   :  { %451 = vrcp.f32 %v226_v25  ;;  %v239_v32 = vand.u32 2147483648, %v226_v25  ;;  %v237_v33 = vand.u32 2147483647, %v226_v25  ;;  %vm233_vm5 = vweird.f32 %v226_v25 }
 0x134   :  { %v240_v37 = vor.u32 1.1754944e-38, %v239_v32  ;;  %vm238_vm7 = vcmp.eq.f32.partialorder %v237_v33, 8.507059e+37 }
 0x137   :  { %v450_v26 = vpop.eup %449 }
 0x138   :  { %v452_v27 = vpop.eup %451  ;;  %v227_v28 = vadd.f32 1.0, %v450_v26 }
 0x139   :  { %v229_v29 = vmul.f32 %v452_v27, %v226_v25  ;;  %vm234_vm4 = vweird.f32 %v452_v27 }
 0x13a   :  { %453 = vrcp.f32 %v227_v28  ;;  %vm235_vm6 = vmor %vm233_vm5, %vm234_vm4  ;;  %v254_v41 = vand.u32 2147483648, %v227_v28  ;;  %v252_v43 = vand.u32 2147483647, %v227_v28  ;;  %vm248_vm9 = vweird.f32 %v227_v28 }
 0x13b   :  { %v230_v30 = vsub.f32 1.0, %v229_v29  ;;  %vm390_vm4 = vcmask 15360   ;;  %vm393_vm5 = vcmask 23552  }
 0x13c   :  { %v255_v46 = vor.u32 1.1754944e-38, %v254_v41  ;;  %vm253_vm11 = vcmp.eq.f32.partialorder %v252_v43, 8.507059e+37 }
 0x13d   :  { %v231_v31 = vmul.f32 %v452_v27, %v230_v30 }
 0x13f   :  { %v232_v34 = vadd.f32 %v452_v27, %v231_v31 }
 0x140   :  { %v454_v35 = vpop.eup %453 }
 0x141   :  { %v236_v36 = vsel %vm235_vm6, %v452_v27, %v232_v34  ;;  %v244_v38 = vmul.f32 %v454_v35, %v227_v28  ;;  %vm249_vm8 = vweird.f32 %v454_v35  ;;  %vm396_vm6 = vcmask 31744  }
 0x142   :  { %v241_v39 = vsel %vm238_vm7, %v240_v37, %v236_v36  ;;  %vm250_vm10 = vmor %vm248_vm9, %vm249_vm8  ;;  %vm399_vm7 = vcmask 39936   ;;  %vm402_vm8 = vcmask 48128  }
 0x143   :  { %v245_v40 = vsub.f32 1.0, %v244_v38  ;;  %v354_v44 = vmul.f32 0.5, %v241_v39 }
 0x145   :  { %v246_v42 = vmul.f32 %v454_v35, %v245_v40 }
 0x147   :  { %v247_v45 = vadd.f32 %v454_v35, %v246_v42 }
 0x148   :  { %358 = vrot.lane.b32.xlu2 %v354_v44, %s550_s0 }
 0x149   :  { %v251_v47 = vsel %vm250_vm10, %v454_v35, %v247_v45 }
 0x14a   :  { %v256_v48 = vsel %vm253_vm11, %v255_v46, %v251_v47 }
 0x14b   :  { %v355_v49 = vmul.f32 0.5, %v256_v48 }
 0x14d   :  { %360 = vrot.lane.b32.xlu0 %v355_v49, %s550_s0 }
 0x19b   :  { %v604_v50 = vpop.xlane.xlu0 %260  ;;  %v606_v51 = vpop.xlane.xlu2 %279 }
 0x19c   :  { %v284_v52 = vsub.f32 %v606_v51, %v604_v50  ;;  %vm320_vm12 = vcmp.eq.f32.partialorder %v588_v12, %v606_v51  ;;  %v265_v56 = vsub.f32 %v588_v12, %v604_v50 }
 0x19d   :  { %v322_v53 = vsel %vm320_vm12, %v583_v4, 7 }
 0x19e   :  { %v324_v54 = vsel %vm277_vm2, %v322_v53, 2147483647  ;;  %v267_v59 = vmul.f32 1.442695, %v265_v56  ;;  %v286_v31 = vmul.f32 1.442695, %v284_v52 }
 0x19f   :  { %v326_v55 = vshra.s32 %v324_v54, 16  ;;  %v325_v15 = vand.u32 65535, %v324_v54 }
 0x1a0   :  { %455 = vpow2.f32 %v267_v59 }
 0x1a1   :  { %v328_v57 = vcvt.s32.f32 %v326_v55  ;;  %v327_v17 = vcvt.s32.f32 %v325_v15 }
 0x1a3   :  { %v616_v58 = vpop.xlane.xlu1 %282  ;;  %329 = vmin.xlane.f32.xlu2 %v328_v57  ;;  %v621_v61 = vpop.xlane.xlu2 %263 }
 0x1a4   :  { %vm321_vm13 = vcmp.eq.f32.partialorder %v597_v20, %v616_v58  ;;  %v266_v1 = vsub.f32 %v597_v20, %v621_v61  ;;  %v285_v56 = vsub.f32 %v616_v58, %v621_v61 }
 0x1a5   :  { %v323_v60 = vsel %vm321_vm13, %v583_v4, 7 }
 0x1a6   :  { %v339_v62 = vsel %vm277_vm2, %v323_v60, 2147483647  ;;  %v269_v3 = vmul.f32 1.442695, %v266_v1  ;;  %v456_v5 = vpop.eup %455  ;;  %v288_v59 = vmul.f32 1.442695, %v285_v56 }
 0x1a7   :  { %v341_v63 = vshra.s32 %v339_v62, 16  ;;  %v271_v7 = vsel %vm258_vm3, %v456_v5, 0.0  ;;  %v340_v19 = vand.u32 65535, %v339_v62 }
 0x1a8   :  { %457 = vpow2.f32 %v269_v3 }
 0x1a9   :  { %v343_v2 = vcvt.s32.f32 %v341_v63  ;;  %v342_v21 = vcvt.s32.f32 %v340_v19 }
 0x1ab   :  { %344 = vmin.xlane.f32.xlu1 %v343_v2  ;;  %v359_v6 = vpop.permute.xlu2 %358 }
 0x1ac   :  { %v364_v8 = vsub.f32 %v241_v39, %v359_v6  ;;  %v368_v11 = vadd.f32 %v359_v6, %v241_v39 }
 0x1ae   :  { %v458_v4 = vpop.eup %457  ;;  %v366_v9 = vmul.f32 16.0, %v364_v8  ;;  %v370_v12 = vmul.f32 16.0, %v368_v11 }
 0x1af   :  { %v274_v10 = vsel %vm258_vm3, %v458_v4, 0.0 }
 0x1b3   :  { %272 = vadd.xlane.f32.xlu1 %v271_v7 }
 0x1bb   :  { %275 = vadd.xlane.f32.xlu1 %v274_v10  ;;  %376 = vrot.lane.b32.xlu2 %v366_v9, %s551_s1 }
 0x1bf   :  { %v361_v13 = vpop.permute.xlu0 %360 }
 0x1c0   :  { %v369_v14 = vadd.f32 %v361_v13, %v256_v48  ;;  %v365_v23 = vsub.f32 %v256_v48, %v361_v13 }
 0x1c2   :  { %v371_v0 = vmul.f32 16.0, %v369_v14  ;;  %v367_v24 = vmul.f32 16.0, %v365_v23 }
 0x1c3   :  { %384 = vrot.lane.b32.xlu2 %v370_v12, %s552_s21 }
 0x1cb   :  { %386 = vrot.lane.b32.xlu2 %v371_v0, %s552_s21 }
 0x216   :  { %v330_v16 = vpop.xlane.xlu2 %329 }
 0x217   :  { %vm331_vm14 = vcmp.eq.f32.partialorder %v328_v57, %v330_v16  ;;  %v336_v37 = vcvt.f32.s32 %v330_v16 }
 0x218   :  { %v332_v18 = vsel %vm331_vm14, %v327_v17, inf }
 0x219   :  { %333 = vmin.xlane.f32.xlu1 %v332_v18  ;;  %v337_v44 = vshll.u32 %v336_v37, 16 }
 0x21e   :  { %v628_v20 = vpop.xlane.xlu1 %344  ;;  %v377_v30 = vpop.permute.xlu2 %376 }
 0x21f   :  { %vm346_vm15 = vcmp.eq.f32.partialorder %v343_v2, %v628_v20  ;;  %v351_v63 = vcvt.f32.s32 %v628_v20 }
 0x220   :  { %v347_v22 = vsel %vm346_vm15, %v342_v21, inf }
 0x221   :  { %348 = vmin.xlane.f32.xlu0 %v347_v22  ;;  %v352_v6 = vshll.u32 %v351_v63, 16 }
 0x226   :  { %v273_v25 = vpop.xlane.xlu1 %272  ;;  %v385_v40 = vpop.permute.xlu2 %384 }
 0x227   :  { %459 = vrcp.f32 %v273_v25  ;;  %v301_v34 = vand.u32 2147483648, %v273_v25  ;;  %vm295_vm1 = vweird.f32 %v273_v25  ;;  %v299_v35 = vand.u32 2147483647, %v273_v25 }
 0x228   :  { %v391_v47 = vsel %vm390_vm4, %v377_v30, %v385_v40 }
 0x229   :  { %v302_v38 = vor.u32 1.1754944e-38, %v301_v34  ;;  %vm300_vm3 = vcmp.eq.f32.partialorder %v299_v35, 8.507059e+37  ;;  %v394_v50 = vsel %vm393_vm5, %v391_v47, %v385_v40 }
 0x22d   :  { %v460_v26 = vpop.eup %459 }
 0x22e   :  { %v291_v27 = vmul.f32 %v460_v26, %v273_v25  ;;  %v276_v32 = vpop.xlane.xlu1 %275  ;;  %vm296_vm0 = vweird.f32 %v460_v26  ;;  %v387_v61 = vpop.permute.xlu2 %386 }
 0x22f   :  { %461 = vrcp.f32 %v276_v32  ;;  %vm297_vm2 = vmor %vm295_vm1, %vm296_vm0  ;;  %v316_v1 = vand.u32 2147483648, %v276_v32  ;;  %vm310_vm10 = vweird.f32 %v276_v32  ;;  %v314_v2 = vand.u32 2147483647, %v276_v32 }
 0x230   :  { %v292_v28 = vsub.f32 1.0, %v291_v27  ;;  %463 = vpow2.f32 %v286_v31 }
 0x231   :  { %465 = vpow2.f32 %v288_v59  ;;  %v317_v7 = vor.u32 1.1754944e-38, %v316_v1  ;;  %vm315_vm12 = vcmp.eq.f32.partialorder %v314_v2, 8.507059e+37 }
 0x232   :  { %378 = vrot.lane.b32.xlu1 %v367_v24, %s551_s1  ;;  %v293_v29 = vmul.f32 %v460_v26, %v292_v28 }
 0x234   :  { %v294_v33 = vadd.f32 %v460_v26, %v293_v29 }
 0x235   :  { %v462_v41 = vpop.eup %461 }
 0x236   :  { %v298_v36 = vsel %vm297_vm2, %v460_v26, %v294_v33  ;;  %v464_v43 = vpop.eup %463  ;;  %v306_v48 = vmul.f32 %v462_v41, %v276_v32  ;;  %vm311_vm9 = vweird.f32 %v462_v41 }
 0x237   :  { %v303_v39 = vsel %vm300_vm3, %v302_v38, %v298_v36  ;;  %vm312_vm11 = vmor %vm310_vm10, %vm311_vm9  ;;  %v466_v58 = vpop.eup %465 }
 0x238   :  { %v304_v46 = vmul.f32 %v464_v43, %v303_v39  ;;  %v307_v53 = vsub.f32 1.0, %v306_v48 }
 0x23a   :  { %v397_v52 = vsel %vm396_vm6, %v394_v50, %v304_v46  ;;  %v308_v57 = vmul.f32 %v462_v41, %v307_v53 }
 0x23c   :  { %v309_v60 = vadd.f32 %v462_v41, %v308_v57 }
 0x23e   :  { %v313_v5 = vsel %vm312_vm11, %v462_v41, %v309_v60 }
 0x23f   :  { %v318_v8 = vsel %vm315_vm12, %v317_v7, %v313_v5 }
 0x240   :  { %v319_v10 = vmul.f32 %v466_v58, %v318_v8 }
 0x28c   :  { %v334_v42 = vpop.xlane.xlu1 %333 }
 0x28d   :  { %v335_v45 = vcvt.f32.s32 %v334_v42 }
 0x28f   :  { %v338_v49 = vadd.s32 %v337_v44, %v335_v45 }
 0x291   :  { %v372_v51 = vcvt.s32.f32 %v338_v49 }
 0x293   :  { %v400_v54 = vsel %vm399_vm7, %v397_v52, %v372_v51 }
 0x294   :  { %v403_v55 = vsel %vm402_vm8, %v400_v54, 0.0  ;;  %v349_v62 = vpop.xlane.xlu0 %348 }
 0x295   :  { %405 = vst [vmem:[#allocation7] sm:$0xff] %v403_v55  ;;  %v350_v3 = vcvt.f32.s32 %v349_v62 }
 0x297   :  { %v353_v4 = vadd.s32 %v352_v6, %v350_v3 }
 0x299   :  { %v373_v12 = vcvt.s32.f32 %v353_v4 }
 0x2a4   :  { %v379_v9 = vpop.permute.xlu1 %378 }
 0x2a5   :  { %v392_v11 = vsel %vm390_vm4, %v379_v9, %v387_v61 }
 0x2a6   :  { %v395_v13 = vsel %vm393_vm5, %v392_v11, %v387_v61 }
 0x2a7   :  { %v398_v14 = vsel %vm396_vm6, %v395_v13, %v319_v10 }
 0x2a8   :  { %v401_v0 = vsel %vm399_vm7, %v398_v14, %v373_v12 }
 0x2a9   :  { %v404_v15 = vsel %vm402_vm8, %v401_v0, 0.0 }
 0x2aa   :  { %406 = vst [vmem:[#allocation7 + $0x8] sm:$0xff] %v404_v15 }
 0x2ab   :  { %419 = dma.vmem_to_hbm [thread:$0]  %s412_s23, 256, %s414_s26, [#allocation4], %s546_s17, %s546_s17, %s547_s18  }
 0x2ac   :  { %543 = dma.done.wait [#allocation4], 256  }
 0x2ad   :  { %544 = vsyncadd [#allocation4], 4294967040 }
 0x2ae   :  { %424 = vsyncpa [#allocation3], 1 }
 0x2af   :  { %425 = vsyncpa [#allocation6], 1 }
 0x2b0   :  { %426 = vsyncpa [#allocation4], 1 }

</bundles_post_ra>
